<compile_context>
chip_gen: v7x
topology: tpu7x:2x2x1
jax: 0.10.0
libtpu: 0.0.40
codegen_flags: <defaults>
</compile_context>

<pallas_src>
import functools

import jax
import jax.numpy as jnp
from jax.experimental import pallas as pl
from jax.experimental.pallas import tpu as pltpu


# ---------------------------------------------------------------------------
# Row-tiled linear projection kernel:  out = x @ W + b     (W, b resident in VMEM)
# ---------------------------------------------------------------------------
def linear_kernel(x_ref, w_ref, b_ref, o_ref):
    y = jnp.dot(x_ref[...], w_ref[...], preferred_element_type=jnp.float32)
    y = y + b_ref[...]                       # (1, E_out) broadcasts over rows
    o_ref[...] = y.astype(o_ref.dtype)


def linear(x, w, b, *, tile_m=512):
    """x: (N, E_in), w: (E_in, E_out), b: (E_out,) -> (N, E_out).

    Row-tiled so the activation stream is double-buffered by BlockSpec pipelining while
    the weight/bias blocks (constant index_map) stay resident in VMEM.  tile_m ~ 512
    amortizes the per-step grid overhead; shrink (or set vmem_limit_bytes) on v7x if
    E_in/E_out grow large.
    """
    N, Ein = x.shape
    Eout = w.shape[1]
    tile_m = min(tile_m, N)
    if tile_m != N:
        tile_m = max(8, (tile_m // 8) * 8)   # keep sublane-aligned row tiles
    grid_m = pl.cdiv(N, tile_m)
    return pl.pallas_call(
        linear_kernel,
        out_shape=jax.ShapeDtypeStruct((N, Eout), x.dtype),
        grid=(grid_m,),
        in_specs=[
            pl.BlockSpec((tile_m, Ein), lambda i: (i, 0)),
            pl.BlockSpec((Ein, Eout), lambda i: (0, 0)),   # resident weight
            pl.BlockSpec((1, Eout), lambda i: (0, 0)),     # resident bias
        ],
        out_specs=pl.BlockSpec((tile_m, Eout), lambda i: (i, 0)),
        compiler_params=pltpu.CompilerParams(dimension_semantics=("parallel",)),
    )(x, w, b.reshape(1, Eout))


# ---------------------------------------------------------------------------
# Fused attention + out_proj kernel: Bt batch elements per grid step.
#   per head h:  S = Q_h K_h^T (scaling pre-folded into Wq) ; P = softmax(S) ; O_h = P V_h
#   heads written into a VMEM scratch (Bt, T, E), then  out = scratch @ Wo + bo.
# ---------------------------------------------------------------------------
def attn_outproj_kernel(qkv_ref, wo_ref, bo_ref, o_ref, w_ref, acc_ref, *, num_heads):
    Bt, T, E3 = qkv_ref.shape
    E = E3 // 3
    H = num_heads
    D = E // H

    for h in range(H):                                   # static unroll; H is small
        # Ref-window loads: only the D lanes this head needs are fetched per slice.
        q = qkv_ref[:, :, pl.ds(h * D, D)]               # (Bt, T, D)  (already scaled)
        k = qkv_ref[:, :, pl.ds(E + h * D, D)]           # (Bt, T, D)
        v = qkv_ref[:, :, pl.ds(2 * E + h * D, D)]       # (Bt, T, D)

        # Batched over Bt; contraction expressed directly (no explicit transpose of K).
        s = jnp.einsum('btd,bsd->bts', q, k, preferred_element_type=jnp.float32)
        s = s - jnp.max(s, axis=-1, keepdims=True)        # stable softmax
        e = jnp.exp(s)
        p = e * pl.reciprocal(jnp.sum(e, axis=-1, keepdims=True), approx=True)

        w_ref[:, h, :, :] = p.astype(w_ref.dtype)          # attention weights out
        acc_ref[:, :, pl.ds(h * D, D)] = jnp.einsum(
            'bts,bsd->btd', p.astype(v.dtype), v, preferred_element_type=jnp.float32)

    # out_proj from the VMEM scratch: single matmul with K-dim = E, lane-dense output.
    o2 = acc_ref[...].astype(wo_ref.dtype).reshape(Bt * T, E)
    out = jnp.dot(o2, wo_ref[...], preferred_element_type=jnp.float32) + bo_ref[...]
    o_ref[...] = out.reshape(Bt, T, E).astype(o_ref.dtype)


def attention_outproj(qkv, wo, bo, num_heads, *, block_b=8):
    """qkv: (B, T, 3E) (Q pre-scaled), wo: (E, E), bo: (E,)
       -> (out (B, T, E), attn_weights (B, H, T, T))."""
    B, T, E3 = qkv.shape
    E = E3 // 3
    H = num_heads
    bt = min(block_b, B)
    while B % bt:                             # largest divisor of B that is <= block_b
        bt -= 1
    kernel = functools.partial(attn_outproj_kernel, num_heads=H)
    return pl.pallas_call(
        kernel,
        out_shape=(
            jax.ShapeDtypeStruct((B, T, E), qkv.dtype),
            jax.ShapeDtypeStruct((B, H, T, T), qkv.dtype),
        ),
        grid=(B // bt,),
        in_specs=[
            pl.BlockSpec((bt, T, 3 * E), lambda i: (i, 0, 0)),
            pl.BlockSpec((E, E), lambda i: (0, 0)),    # resident out_proj weight
            pl.BlockSpec((1, E), lambda i: (0, 0)),    # resident out_proj bias
        ],
        out_specs=(
            pl.BlockSpec((bt, T, E), lambda i: (i, 0, 0)),
            pl.BlockSpec((bt, H, T, T), lambda i: (i, 0, 0, 0)),
        ),
        scratch_shapes=[pltpu.VMEM((bt, T, E), jnp.float32)],   # per-step head accumulator
        compiler_params=pltpu.CompilerParams(dimension_semantics=("parallel",)),
    )(qkv, wo, bo.reshape(1, E))


# ---------------------------------------------------------------------------
# Parameter fusion (do this ONCE, outside jit / the per-call forward)
# ---------------------------------------------------------------------------
def fuse_params(params, num_heads):
    """Concatenate Wq|Wk|Wv -> (E, 3E) and fold the 1/sqrt(D) scaling into the Q columns."""
    E = params["wq"].shape[0]
    D = E // num_heads
    scaling = float(D) ** -0.5
    wqkv = jnp.concatenate(
        [params["wq"] * scaling, params["wk"], params["wv"]], axis=1)     # (E, 3E)
    bqkv = jnp.concatenate(
        [params["bq"] * scaling, params["bk"], params["bv"]], axis=0)     # (3E,)
    return {"wqkv": wqkv, "bqkv": bqkv, "wo": params["wo"], "bo": params["bo"]}


# ---------------------------------------------------------------------------
# Full PatchTSTAttention forward (self-attention, no mask, eval mode)
# ---------------------------------------------------------------------------
def patchtst_attention(hidden_states, fused, num_heads, *, tile_m=512, block_b=8):
    B, T, E = hidden_states.shape
    x2 = hidden_states.reshape(B * T, E)
    # Fused QKV projection: one pass over the activations.
    qkv = linear(x2, fused["wqkv"], fused["bqkv"], tile_m=tile_m).reshape(B, T, 3 * E)
    # Fused attention + out_proj; head split/merge handled in VMEM (no XLA transposes or
    # extra HBM round trips between the projections and out_proj).
    return attention_outproj(qkv, fused["wo"], fused["bo"], num_heads, block_b=block_b)


# ---------------------------------------------------------------------------
# Pure-JAX reference (mirrors the PyTorch eager path) for verification
# ---------------------------------------------------------------------------
def reference(hidden_states, params, num_heads):
    B, T, E = hidden_states.shape
    D = E // num_heads
    scaling = float(D) ** -0.5
    x2 = hidden_states.reshape(B * T, E)
    q = (x2 @ params["wq"] + params["bq"]).reshape(B, T, num_heads, D).transpose(0, 2, 1, 3)
    k = (x2 @ params["wk"] + params["bk"]).reshape(B, T, num_heads, D).transpose(0, 2, 1, 3)
    v = (x2 @ params["wv"] + params["bv"]).reshape(B, T, num_heads, D).transpose(0, 2, 1, 3)
    s = jnp.einsum("bhtd,bhsd->bhts", q, k) * scaling
    p = jax.nn.softmax(s, axis=-1)
    o = jnp.einsum("bhts,bhsd->bhtd", p, v)
    o = o.transpose(0, 2, 1, 3).reshape(B * T, E)
    out = (o @ params["wo"] + params["bo"]).reshape(B, T, E)
    return out, p


if __name__ == "__main__":
    # Small shapes consistent with the module's forward: Batch x Time x Channel
    B, T, E, H = 4, 8, 32, 4
    key = jax.random.PRNGKey(0)
    keys = jax.random.split(key, 9)

    def init_w(k):
        return (jax.random.normal(k, (E, E), jnp.float32) * 0.05).astype(jnp.float32)

    def init_b(k):
        return (jax.random.normal(k, (E,), jnp.float32) * 0.01).astype(jnp.float32)

    params = {
        "wq": init_w(keys[0]), "bq": init_b(keys[1]),
        "wk": init_w(keys[2]), "bk": init_b(keys[3]),
        "wv": init_w(keys[4]), "bv": init_b(keys[5]),
        "wo": init_w(keys[6]), "bo": init_b(keys[7]),
    }
    hidden_states = jax.random.normal(keys[8], (B, T, E), jnp.float32)

    # Pre-fuse QKV params once, outside jit (no per-call concat).
    fused = fuse_params(params, H)

    # tile_m=16 / block_b=2 exercise the multi-step pipelined grids at these toy sizes.
    fwd = jax.jit(functools.partial(patchtst_attention, num_heads=H, tile_m=16, block_b=2))
    out, attn_w = fwd(hidden_states, fused)
    out = jax.block_until_ready(out)
    attn_w = jax.block_until_ready(attn_w)

    ref_out, ref_w = reference(hidden_states, params, H)
    assert out.shape == (B, T, E) and attn_w.shape == (B, H, T, T)
    # Tolerance covers the approx (EUP) reciprocal used in the softmax denominator,
    # which also makes returned attn_weights rows sum to ~1 (not exactly 1).
    assert jnp.allclose(out, ref_out, atol=2e-3, rtol=2e-3)
    assert jnp.allclose(attn_w, ref_w, atol=2e-3, rtol=2e-3)

    print("KERNEL_OK")
</pallas_src>

<mosaic_0001>
module attributes {stable_mosaic.version = 11 : i64} {
  func.func @linear_kernel(%arg0: i32, %arg1: memref<16x32xf32, #tpu.memory_space<vmem>>, %arg2: memref<32x96xf32, #tpu.memory_space<vmem>>, %arg3: memref<1x96xf32, #tpu.memory_space<vmem>>, %arg4: memref<16x96xf32, #tpu.memory_space<vmem>>) attributes {dimension_semantics = [#tpu.dimension_semantics<parallel>], iteration_bounds = array<i64: 2>, scalar_prefetch = 0 : i64, scratch_operands = 0 : i64, tpu.core_type = #tpu.core_type<tc>, window_params = [{transform_indices = @transform_0, window_bounds = array<i64: 16, 32>}, {pipeline_mode = #tpu.pipeline_mode<synchronous>, transform_indices = @transform_1, window_bounds = array<i64: 32, 96>}, {pipeline_mode = #tpu.pipeline_mode<synchronous>, transform_indices = @transform_2, window_bounds = array<i64: 1, 96>}, {transform_indices = @transform_3, window_bounds = array<i64: 16, 96>}]} {
    %c0 = arith.constant 0 : index
    %c0_0 = arith.constant 0 : index
    %0 = vector.load %arg1[%c0, %c0_0] : memref<16x32xf32, #tpu.memory_space<vmem>>, vector<16x32xf32>
    %c0_1 = arith.constant 0 : index
    %c0_2 = arith.constant 0 : index
    %1 = vector.load %arg2[%c0_1, %c0_2] : memref<32x96xf32, #tpu.memory_space<vmem>>, vector<32x96xf32>
    %cst = arith.constant dense<0.000000e+00> : vector<16x96xf32>
    %2 = tpu.matmul %0, %1, %cst {dimension_numbers = #tpu.dot_dimension_numbers<[1], [0], [0], [1], [0, 0, 1, 1], [], []>} : vector<16x32xf32>, vector<32x96xf32>, vector<16x96xf32> -> vector<16x96xf32>
    %c0_3 = arith.constant 0 : index
    %c0_4 = arith.constant 0 : index
    %3 = vector.load %arg3[%c0_3, %c0_4] : memref<1x96xf32, #tpu.memory_space<vmem>>, vector<1x96xf32>
    %4 = vector.broadcast %3 : vector<1x96xf32> to vector<16x96xf32>
    %5 = arith.addf %2, %4 : vector<16x96xf32>
    %c0_5 = arith.constant 0 : index
    %c0_6 = arith.constant 0 : index
    %6 = vector.load %arg4[%c0_5, %c0_6] : memref<16x96xf32, #tpu.memory_space<vmem>>, vector<16x96xf32>
    tpu.vector_store %arg4[%c0_5, %c0_6], %5 {strides = array<i32>} : memref<16x96xf32, #tpu.memory_space<vmem>>, vector<16x96xf32>,
    return
  }
  func.func @transform_0(%arg0: i32) -> (i32, i32) {
    %c0_i32 = arith.constant 0 : i32
    %c0_i32_0 = arith.constant 0 : i32
    return %arg0, %c0_i32 : i32, i32
  }
  func.func @transform_1(%arg0: i32) -> (i32, i32) {
    %c0_i32 = arith.constant 0 : i32
    %c0_i32_0 = arith.constant 0 : i32
    %c0_i32_1 = arith.constant 0 : i32
    return %c0_i32, %c0_i32_0 : i32, i32
  }
  func.func @transform_2(%arg0: i32) -> (i32, i32) {
    %c0_i32 = arith.constant 0 : i32
    %c0_i32_0 = arith.constant 0 : i32
    %c0_i32_1 = arith.constant 0 : i32
    return %c0_i32, %c0_i32_0 : i32, i32
  }
  func.func @transform_3(%arg0: i32) -> (i32, i32) {
    %c0_i32 = arith.constant 0 : i32
    %c0_i32_0 = arith.constant 0 : i32
    return %arg0, %c0_i32 : i32, i32
  }
}

module attributes {stable_mosaic.version = 11 : i64} {
  func.func @attn_outproj_kernel(%arg0: i32, %arg1: memref<2x8x96xf32, #tpu.memory_space<vmem>>, %arg2: memref<32x32xf32, #tpu.memory_space<vmem>>, %arg3: memref<1x32xf32, #tpu.memory_space<vmem>>, %arg4: memref<2x8x32xf32, #tpu.memory_space<vmem>>, %arg5: memref<2x4x8x8xf32, #tpu.memory_space<vmem>>, %arg6: memref<2x8x32xf32, #tpu.memory_space<vmem>>) attributes {dimension_semantics = [#tpu.dimension_semantics<parallel>], iteration_bounds = array<i64: 2>, scalar_prefetch = 0 : i64, scratch_operands = 1 : i64, tpu.core_type = #tpu.core_type<tc>, window_params = [{transform_indices = @transform_0, window_bounds = array<i64: 2, 8, 96>}, {pipeline_mode = #tpu.pipeline_mode<synchronous>, transform_indices = @transform_1, window_bounds = array<i64: 32, 32>}, {pipeline_mode = #tpu.pipeline_mode<synchronous>, transform_indices = @transform_2, window_bounds = array<i64: 1, 32>}, {transform_indices = @transform_3, window_bounds = array<i64: 2, 8, 32>}, {transform_indices = @transform_4, window_bounds = array<i64: 2, 4, 8, 8>}]} {
    %c0 = arith.constant 0 : index
    %c0_0 = arith.constant 0 : index
    %c0_1 = arith.constant 0 : index
    %0 = vector.load %arg1[%c0, %c0_0, %c0_1] : memref<2x8x96xf32, #tpu.memory_space<vmem>>, vector<2x8x8xf32>
    %c0_2 = arith.constant 0 : index
    %c0_3 = arith.constant 0 : index
    %c32 = arith.constant 32 : index
    %1 = vector.load %arg1[%c0_2, %c0_3, %c32] : memref<2x8x96xf32, #tpu.memory_space<vmem>>, vector<2x8x8xf32>
    %c0_4 = arith.constant 0 : index
    %c0_5 = arith.constant 0 : index
    %c64 = arith.constant 64 : index
    %2 = vector.load %arg1[%c0_4, %c0_5, %c64] : memref<2x8x96xf32, #tpu.memory_space<vmem>>, vector<2x8x8xf32>
    "tpu.trace_start"() <{level = 10 : i32, message = "btd,bsd->bts"}> : () -> ()
    %cst = arith.constant dense<0.000000e+00> : vector<2x8x8xf32>
    %3 = tpu.matmul %0, %1, %cst {dimension_numbers = #tpu.dot_dimension_numbers<[2], [2], [1], [1], [0, 0, 0, 1, 1, 1], [0], [0]>} : vector<2x8x8xf32>, vector<2x8x8xf32>, vector<2x8x8xf32> -> vector<2x8x8xf32>
    "tpu.trace_stop"() : () -> ()
    %cst_6 = arith.constant dense<0xFF800000> : vector<2x8xf32>
    %4 = vector.multi_reduction <maximumf>, %3, %cst_6 [2] : vector<2x8x8xf32> to vector<2x8xf32>
    %5 = vector.shape_cast %4 : vector<2x8xf32> to vector<2x8x1xf32>
    %6 = vector.broadcast %5 : vector<2x8x1xf32> to vector<2x8x8xf32>
    %7 = arith.subf %3, %6 : vector<2x8x8xf32>
    %8 = math.exp %7 : vector<2x8x8xf32>
    %cst_7 = arith.constant dense<0.000000e+00> : vector<2x8xf32>
    %9 = vector.multi_reduction <add>, %8, %cst_7 [2] : vector<2x8x8xf32> to vector<2x8xf32>
    %10 = vector.shape_cast %9 : vector<2x8xf32> to vector<2x8x1xf32>
    %11 = tpu.reciprocal %10 {approx = true} : vector<2x8x1xf32> -> vector<2x8x1xf32>
    %12 = vector.broadcast %11 : vector<2x8x1xf32> to vector<2x8x8xf32>
    %13 = arith.mulf %8, %12 : vector<2x8x8xf32>
    %c0_8 = arith.constant 0 : index
    %c0_9 = arith.constant 0 : index
    %c0_10 = arith.constant 0 : index
    %c0_11 = arith.constant 0 : index
    %14 = vector.load %arg5[%c0_8, %c0_9, %c0_10, %c0_11] : memref<2x4x8x8xf32, #tpu.memory_space<vmem>>, vector<2x1x8x8xf32>
    %15 = vector.shape_cast %14 : vector<2x1x8x8xf32> to vector<2x8x8xf32>
    %16 = vector.shape_cast %13 : vector<2x8x8xf32> to vector<2x1x8x8xf32>
    tpu.vector_store %arg5[%c0_8, %c0_9, %c0_10, %c0_11], %16 {strides = array<i32>} : memref<2x4x8x8xf32, #tpu.memory_space<vmem>>, vector<2x1x8x8xf32>,
    "tpu.trace_start"() <{level = 10 : i32, message = "bts,bsd->btd"}> : () -> ()
    %cst_12 = arith.constant dense<0.000000e+00> : vector<2x8x8xf32>
    %17 = tpu.matmul %13, %2, %cst_12 {dimension_numbers = #tpu.dot_dimension_numbers<[2], [1], [1], [2], [0, 0, 0, 1, 1, 2], [0], [0]>} : vector<2x8x8xf32>, vector<2x8x8xf32>, vector<2x8x8xf32> -> vector<2x8x8xf32>
    "tpu.trace_stop"() : () -> ()
    %c0_13 = arith.constant 0 : index
    %c0_14 = arith.constant 0 : index
    %c0_15 = arith.constant 0 : index
    %18 = vector.load %arg6[%c0_13, %c0_14, %c0_15] : memref<2x8x32xf32, #tpu.memory_space<vmem>>, vector<2x8x8xf32>
    tpu.vector_store %arg6[%c0_13, %c0_14, %c0_15], %17 {strides = array<i32>} : memref<2x8x32xf32, #tpu.memory_space<vmem>>, vector<2x8x8xf32>,
    %c0_16 = arith.constant 0 : index
    %c0_17 = arith.constant 0 : index
    %c8 = arith.constant 8 : index
    %19 = vector.load %arg1[%c0_16, %c0_17, %c8] : memref<2x8x96xf32, #tpu.memory_space<vmem>>, vector<2x8x8xf32>
    %c0_18 = arith.constant 0 : index
    %c0_19 = arith.constant 0 : index
    %c40 = arith.constant 40 : index
    %20 = vector.load %arg1[%c0_18, %c0_19, %c40] : memref<2x8x96xf32, #tpu.memory_space<vmem>>, vector<2x8x8xf32>
    %c0_20 = arith.constant 0 : index
    %c0_21 = arith.constant 0 : index
    %c72 = arith.constant 72 : index
    %21 = vector.load %arg1[%c0_20, %c0_21, %c72] : memref<2x8x96xf32, #tpu.memory_space<vmem>>, vector<2x8x8xf32>
    "tpu.trace_start"() <{level = 10 : i32, message = "btd,bsd->bts"}> : () -> ()
    %cst_22 = arith.constant dense<0.000000e+00> : vector<2x8x8xf32>
    %22 = tpu.matmul %19, %20, %cst_22 {dimension_numbers = #tpu.dot_dimension_numbers<[2], [2], [1], [1], [0, 0, 0, 1, 1, 1], [0], [0]>} : vector<2x8x8xf32>, vector<2x8x8xf32>, vector<2x8x8xf32> -> vector<2x8x8xf32>
    "tpu.trace_stop"() : () -> ()
    %cst_23 = arith.constant dense<0xFF800000> : vector<2x8xf32>
    %23 = vector.multi_reduction <maximumf>, %22, %cst_23 [2] : vector<2x8x8xf32> to vector<2x8xf32>
    %24 = vector.shape_cast %23 : vector<2x8xf32> to vector<2x8x1xf32>
    %25 = vector.broadcast %24 : vector<2x8x1xf32> to vector<2x8x8xf32>
    %26 = arith.subf %22, %25 : vector<2x8x8xf32>
    %27 = math.exp %26 : vector<2x8x8xf32>
    %cst_24 = arith.constant dense<0.000000e+00> : vector<2x8xf32>
    %28 = vector.multi_reduction <add>, %27, %cst_24 [2] : vector<2x8x8xf32> to vector<2x8xf32>
    %29 = vector.shape_cast %28 : vector<2x8xf32> to vector<2x8x1xf32>
    %30 = tpu.reciprocal %29 {approx = true} : vector<2x8x1xf32> -> vector<2x8x1xf32>
    %31 = vector.broadcast %30 : vector<2x8x1xf32> to vector<2x8x8xf32>
    %32 = arith.mulf %27, %31 : vector<2x8x8xf32>
    %c0_25 = arith.constant 0 : index
    %c1 = arith.constant 1 : index
    %c0_26 = arith.constant 0 : index
    %c0_27 = arith.constant 0 : index
    %33 = vector.load %arg5[%c0_25, %c1, %c0_26, %c0_27] : memref<2x4x8x8xf32, #tpu.memory_space<vmem>>, vector<2x1x8x8xf32>
    %34 = vector.shape_cast %33 : vector<2x1x8x8xf32> to vector<2x8x8xf32>
    %35 = vector.shape_cast %32 : vector<2x8x8xf32> to vector<2x1x8x8xf32>
    tpu.vector_store %arg5[%c0_25, %c1, %c0_26, %c0_27], %35 {strides = array<i32>} : memref<2x4x8x8xf32, #tpu.memory_space<vmem>>, vector<2x1x8x8xf32>,
    "tpu.trace_start"() <{level = 10 : i32, message = "bts,bsd->btd"}> : () -> ()
    %cst_28 = arith.constant dense<0.000000e+00> : vector<2x8x8xf32>
    %36 = tpu.matmul %32, %21, %cst_28 {dimension_numbers = #tpu.dot_dimension_numbers<[2], [1], [1], [2], [0, 0, 0, 1, 1, 2], [0], [0]>} : vector<2x8x8xf32>, vector<2x8x8xf32>, vector<2x8x8xf32> -> vector<2x8x8xf32>
    "tpu.trace_stop"() : () -> ()
    %c0_29 = arith.constant 0 : index
    %c0_30 = arith.constant 0 : index
    %c8_31 = arith.constant 8 : index
    %37 = vector.load %arg6[%c0_29, %c0_30, %c8_31] : memref<2x8x32xf32, #tpu.memory_space<vmem>>, vector<2x8x8xf32>
    tpu.vector_store %arg6[%c0_29, %c0_30, %c8_31], %36 {strides = array<i32>} : memref<2x8x32xf32, #tpu.memory_space<vmem>>, vector<2x8x8xf32>,
    %c0_32 = arith.constant 0 : index
    %c0_33 = arith.constant 0 : index
    %c16 = arith.constant 16 : index
    %38 = vector.load %arg1[%c0_32, %c0_33, %c16] : memref<2x8x96xf32, #tpu.memory_space<vmem>>, vector<2x8x8xf32>
    %c0_34 = arith.constant 0 : index
    %c0_35 = arith.constant 0 : index
    %c48 = arith.constant 48 : index
    %39 = vector.load %arg1[%c0_34, %c0_35, %c48] : memref<2x8x96xf32, #tpu.memory_space<vmem>>, vector<2x8x8xf32>
    %c0_36 = arith.constant 0 : index
    %c0_37 = arith.constant 0 : index
    %c80 = arith.constant 80 : index
    %40 = vector.load %arg1[%c0_36, %c0_37, %c80] : memref<2x8x96xf32, #tpu.memory_space<vmem>>, vector<2x8x8xf32>
    "tpu.trace_start"() <{level = 10 : i32, message = "btd,bsd->bts"}> : () -> ()
    %cst_38 = arith.constant dense<0.000000e+00> : vector<2x8x8xf32>
    %41 = tpu.matmul %38, %39, %cst_38 {dimension_numbers = #tpu.dot_dimension_numbers<[2], [2], [1], [1], [0, 0, 0, 1, 1, 1], [0], [0]>} : vector<2x8x8xf32>, vector<2x8x8xf32>, vector<2x8x8xf32> -> vector<2x8x8xf32>
    "tpu.trace_stop"() : () -> ()
    %cst_39 = arith.constant dense<0xFF800000> : vector<2x8xf32>
    %42 = vector.multi_reduction <maximumf>, %41, %cst_39 [2] : vector<2x8x8xf32> to vector<2x8xf32>
    %43 = vector.shape_cast %42 : vector<2x8xf32> to vector<2x8x1xf32>
    %44 = vector.broadcast %43 : vector<2x8x1xf32> to vector<2x8x8xf32>
    %45 = arith.subf %41, %44 : vector<2x8x8xf32>
    %46 = math.exp %45 : vector<2x8x8xf32>
    %cst_40 = arith.constant dense<0.000000e+00> : vector<2x8xf32>
    %47 = vector.multi_reduction <add>, %46, %cst_40 [2] : vector<2x8x8xf32> to vector<2x8xf32>
    %48 = vector.shape_cast %47 : vector<2x8xf32> to vector<2x8x1xf32>
    %49 = tpu.reciprocal %48 {approx = true} : vector<2x8x1xf32> -> vector<2x8x1xf32>
    %50 = vector.broadcast %49 : vector<2x8x1xf32> to vector<2x8x8xf32>
    %51 = arith.mulf %46, %50 : vector<2x8x8xf32>
    %c0_41 = arith.constant 0 : index
    %c2 = arith.constant 2 : index
    %c0_42 = arith.constant 0 : index
    %c0_43 = arith.constant 0 : index
    %52 = vector.load %arg5[%c0_41, %c2, %c0_42, %c0_43] : memref<2x4x8x8xf32, #tpu.memory_space<vmem>>, vector<2x1x8x8xf32>
    %53 = vector.shape_cast %52 : vector<2x1x8x8xf32> to vector<2x8x8xf32>
    %54 = vector.shape_cast %51 : vector<2x8x8xf32> to vector<2x1x8x8xf32>
    tpu.vector_store %arg5[%c0_41, %c2, %c0_42, %c0_43], %54 {strides = array<i32>} : memref<2x4x8x8xf32, #tpu.memory_space<vmem>>, vector<2x1x8x8xf32>,
    "tpu.trace_start"() <{level = 10 : i32, message = "bts,bsd->btd"}> : () -> ()
    %cst_44 = arith.constant dense<0.000000e+00> : vector<2x8x8xf32>
    %55 = tpu.matmul %51, %40, %cst_44 {dimension_numbers = #tpu.dot_dimension_numbers<[2], [1], [1], [2], [0, 0, 0, 1, 1, 2], [0], [0]>} : vector<2x8x8xf32>, vector<2x8x8xf32>, vector<2x8x8xf32> -> vector<2x8x8xf32>
    "tpu.trace_stop"() : () -> ()
    %c0_45 = arith.constant 0 : index
    %c0_46 = arith.constant 0 : index
    %c16_47 = arith.constant 16 : index
    %56 = vector.load %arg6[%c0_45, %c0_46, %c16_47] : memref<2x8x32xf32, #tpu.memory_space<vmem>>, vector<2x8x8xf32>
    tpu.vector_store %arg6[%c0_45, %c0_46, %c16_47], %55 {strides = array<i32>} : memref<2x8x32xf32, #tpu.memory_space<vmem>>, vector<2x8x8xf32>,
    %c0_48 = arith.constant 0 : index
    %c0_49 = arith.constant 0 : index
    %c24 = arith.constant 24 : index
    %57 = vector.load %arg1[%c0_48, %c0_49, %c24] : memref<2x8x96xf32, #tpu.memory_space<vmem>>, vector<2x8x8xf32>
    %c0_50 = arith.constant 0 : index
    %c0_51 = arith.constant 0 : index
    %c56 = arith.constant 56 : index
    %58 = vector.load %arg1[%c0_50, %c0_51, %c56] : memref<2x8x96xf32, #tpu.memory_space<vmem>>, vector<2x8x8xf32>
    %c0_52 = arith.constant 0 : index
    %c0_53 = arith.constant 0 : index
    %c88 = arith.constant 88 : index
    %59 = vector.load %arg1[%c0_52, %c0_53, %c88] : memref<2x8x96xf32, #tpu.memory_space<vmem>>, vector<2x8x8xf32>
    "tpu.trace_start"() <{level = 10 : i32, message = "btd,bsd->bts"}> : () -> ()
    %cst_54 = arith.constant dense<0.000000e+00> : vector<2x8x8xf32>
    %60 = tpu.matmul %57, %58, %cst_54 {dimension_numbers = #tpu.dot_dimension_numbers<[2], [2], [1], [1], [0, 0, 0, 1, 1, 1], [0], [0]>} : vector<2x8x8xf32>, vector<2x8x8xf32>, vector<2x8x8xf32> -> vector<2x8x8xf32>
    "tpu.trace_stop"() : () -> ()
    %cst_55 = arith.constant dense<0xFF800000> : vector<2x8xf32>
    %61 = vector.multi_reduction <maximumf>, %60, %cst_55 [2] : vector<2x8x8xf32> to vector<2x8xf32>
    %62 = vector.shape_cast %61 : vector<2x8xf32> to vector<2x8x1xf32>
    %63 = vector.broadcast %62 : vector<2x8x1xf32> to vector<2x8x8xf32>
    %64 = arith.subf %60, %63 : vector<2x8x8xf32>
    %65 = math.exp %64 : vector<2x8x8xf32>
    %cst_56 = arith.constant dense<0.000000e+00> : vector<2x8xf32>
    %66 = vector.multi_reduction <add>, %65, %cst_56 [2] : vector<2x8x8xf32> to vector<2x8xf32>
    %67 = vector.shape_cast %66 : vector<2x8xf32> to vector<2x8x1xf32>
    %68 = tpu.reciprocal %67 {approx = true} : vector<2x8x1xf32> -> vector<2x8x1xf32>
    %69 = vector.broadcast %68 : vector<2x8x1xf32> to vector<2x8x8xf32>
    %70 = arith.mulf %65, %69 : vector<2x8x8xf32>
    %c0_57 = arith.constant 0 : index
    %c3 = arith.constant 3 : index
    %c0_58 = arith.constant 0 : index
    %c0_59 = arith.constant 0 : index
    %71 = vector.load %arg5[%c0_57, %c3, %c0_58, %c0_59] : memref<2x4x8x8xf32, #tpu.memory_space<vmem>>, vector<2x1x8x8xf32>
    %72 = vector.shape_cast %71 : vector<2x1x8x8xf32> to vector<2x8x8xf32>
    %73 = vector.shape_cast %70 : vector<2x8x8xf32> to vector<2x1x8x8xf32>
    tpu.vector_store %arg5[%c0_57, %c3, %c0_58, %c0_59], %73 {strides = array<i32>} : memref<2x4x8x8xf32, #tpu.memory_space<vmem>>, vector<2x1x8x8xf32>,
    "tpu.trace_start"() <{level = 10 : i32, message = "bts,bsd->btd"}> : () -> ()
    %cst_60 = arith.constant dense<0.000000e+00> : vector<2x8x8xf32>
    %74 = tpu.matmul %70, %59, %cst_60 {dimension_numbers = #tpu.dot_dimension_numbers<[2], [1], [1], [2], [0, 0, 0, 1, 1, 2], [0], [0]>} : vector<2x8x8xf32>, vector<2x8x8xf32>, vector<2x8x8xf32> -> vector<2x8x8xf32>
    "tpu.trace_stop"() : () -> ()
    %c0_61 = arith.constant 0 : index
    %c0_62 = arith.constant 0 : index
    %c24_63 = arith.constant 24 : index
    %75 = vector.load %arg6[%c0_61, %c0_62, %c24_63] : memref<2x8x32xf32, #tpu.memory_space<vmem>>, vector<2x8x8xf32>
    tpu.vector_store %arg6[%c0_61, %c0_62, %c24_63], %74 {strides = array<i32>} : memref<2x8x32xf32, #tpu.memory_space<vmem>>, vector<2x8x8xf32>,
    %c0_64 = arith.constant 0 : index
    %c0_65 = arith.constant 0 : index
    %c0_66 = arith.constant 0 : index
    %76 = vector.load %arg6[%c0_64, %c0_65, %c0_66] : memref<2x8x32xf32, #tpu.memory_space<vmem>>, vector<2x8x32xf32>
    %77 = vector.shape_cast %76 : vector<2x8x32xf32> to vector<16x32xf32>
    %c0_67 = arith.constant 0 : index
    %c0_68 = arith.constant 0 : index
    %78 = vector.load %arg2[%c0_67, %c0_68] : memref<32x32xf32, #tpu.memory_space<vmem>>, vector<32x32xf32>
    %cst_69 = arith.constant dense<0.000000e+00> : vector<16x32xf32>
    %79 = tpu.matmul %77, %78, %cst_69 {dimension_numbers = #tpu.dot_dimension_numbers<[1], [0], [0], [1], [0, 0, 1, 1], [], []>} : vector<16x32xf32>, vector<32x32xf32>, vector<16x32xf32> -> vector<16x32xf32>
    %c0_70 = arith.constant 0 : index
    %c0_71 = arith.constant 0 : index
    %80 = vector.load %arg3[%c0_70, %c0_71] : memref<1x32xf32, #tpu.memory_space<vmem>>, vector<1x32xf32>
    %81 = vector.broadcast %80 : vector<1x32xf32> to vector<16x32xf32>
    %82 = arith.addf %79, %81 : vector<16x32xf32>
    %83 = vector.shape_cast %82 : vector<16x32xf32> to vector<2x8x32xf32>
    %c0_72 = arith.constant 0 : index
    %c0_73 = arith.constant 0 : index
    %c0_74 = arith.constant 0 : index
    %84 = vector.load %arg4[%c0_72, %c0_73, %c0_74] : memref<2x8x32xf32, #tpu.memory_space<vmem>>, vector<2x8x32xf32>
    tpu.vector_store %arg4[%c0_72, %c0_73, %c0_74], %83 {strides = array<i32>} : memref<2x8x32xf32, #tpu.memory_space<vmem>>, vector<2x8x32xf32>,
    return
  }
  func.func @transform_0(%arg0: i32) -> (i32, i32, i32) {
    %c0_i32 = arith.constant 0 : i32
    %c0_i32_0 = arith.constant 0 : i32
    %c0_i32_1 = arith.constant 0 : i32
    return %arg0, %c0_i32, %c0_i32_0 : i32, i32, i32
  }
  func.func @transform_1(%arg0: i32) -> (i32, i32) {
    %c0_i32 = arith.constant 0 : i32
    %c0_i32_0 = arith.constant 0 : i32
    %c0_i32_1 = arith.constant 0 : i32
    return %c0_i32, %c0_i32_0 : i32, i32
  }
  func.func @transform_2(%arg0: i32) -> (i32, i32) {
    %c0_i32 = arith.constant 0 : i32
    %c0_i32_0 = arith.constant 0 : i32
    %c0_i32_1 = arith.constant 0 : i32
    return %c0_i32, %c0_i32_0 : i32, i32
  }
  func.func @transform_3(%arg0: i32) -> (i32, i32, i32) {
    %c0_i32 = arith.constant 0 : i32
    %c0_i32_0 = arith.constant 0 : i32
    %c0_i32_1 = arith.constant 0 : i32
    return %arg0, %c0_i32, %c0_i32_0 : i32, i32, i32
  }
  func.func @transform_4(%arg0: i32) -> (i32, i32, i32, i32) {
    %c0_i32 = arith.constant 0 : i32
    %c0_i32_0 = arith.constant 0 : i32
    %c0_i32_1 = arith.constant 0 : i32
    %c0_i32_2 = arith.constant 0 : i32
    return %arg0, %c0_i32, %c0_i32_0, %c0_i32_1 : i32, i32, i32, i32
  }
}

</mosaic_0001>

<bundles_post_ra>
// kernel: patchtst_attention.2
= control target key start
LH: loop header
LB: loop body
LE: loop exit
PB: predicated region body
PF: predicated region fallthrough
CT: control target
= control target key end

     0   :  { %8 = vsyncpa [#allocation3], 0  ;;  %s755_s0 = inlined_call_operand.hbm [shape: f32[32,32], index: 0, kind: input, shape index: {}]   ;;  %s756_s1 = inlined_call_operand.hbm [shape: f32[32,96], index: 1, kind: input, shape index: {}]   ;;  %s757_s2 = inlined_call_operand.vmem [shape: f32[1,96], index: 2, kind: input, shape index: {}]   ;;  %s758_s3 = inlined_call_operand.vmem [shape: f32[32,96], index: 3, kind: output, shape index: {}]  }
   0x1   :  { %10 = vsyncpa [#allocation3 + $0x1], 0 }
   0x2   :  { %11 = vsyncpa [#allocation5], 0  ;;  %s601_s12 = smov 0   ;;  %s603_s13 = smov 0  }
   0x3   :  { %s605_s14 = smov 0   ;;  %s607_s15 = smov 0  }
   0x4 LB: > { %s383_s16 = sadd.s32 4294967295, %s575_s15   ;;  %p37_p0 = scmp.ne.s32.totalorder %s567_s13, %s563_s12  ;;  %s575_s15 = sphi %s607_s15, %s774_s15   ;;  %s571_s14 = sphi %s605_s14, %s773_s14   ;;  %s567_s13 = sphi %s603_s13, %s772_s13   ;;  %s563_s12 = sphi %s601_s12, %s771_s12  }
   0x5   : > { %p623_p1 = scmp.eq.s32.totalorder %s383_s16, 0  ;;  %p385_p2 = scmp.ge.s32.totalorder %s575_s15, 1 }
   0x6   : > { %p116_p3 = scmp.lt.s32.totalorder %s575_s15, 3  ;;  %s577_s20 = smov [#allocation4]  }
   0x7   : > { %s763_s17 = scalar_select %p623_p1, 1, 0 }
   0x8   : > { %p631_p4 = por %p623_p1, %p37_p0  ;;  %p635_p5 = pnand %p385_p2, %p116_p3 }
   0x9   : > { %s128_s21 = sshll.u32 %s577_s20, 4  ;;  %s648_s23 = sadd.s32 1, %s575_s15   ;;  %s129_s21 = int_to_ptr.vmem [resolvable:$true] %s128_s21 }
   0xa   : > { %s764_s18 = scalar_select %p631_p4, 1, 0 }
   0xb   : > { %s765_s19 = scalar_select %p635_p5, 1, 0 }
   0xc   : > { %p433_p6 = pneg %p635_p5  ;;  %s24_s24 = sadd.s32 1, %s571_s14 }
   0xd   : > { %s21_s25 = ssub.s32 %s575_s15, %s648_s23  ;;  %s479_s28 = scalar_lea.hbm %s756_s1, 512 }
   0xe   : > { %p643_p7 = pnand %p433_p6, %p623_p1  ;;  %p480_p8 = scmp.ne.s32.totalorder %s756_s1, %s479_s28 }
   0xf   : > { %p486_p12 = scmp.lt.u32.totalorder %s479_s28, %s756_s1 }
  0x10   : > { %p481_p9 = pneg %p643_p7 }
  0x12   : > { %p482_p10 = pnand %p481_p9, %p480_p8 }
  0x14   : > { %p483_p11 = pneg %p482_p10 }
  0x16   : > { %p488_p13 = pnand %p486_p12, %p483_p11 }
  0x18   : > { %491 = shalt.err (!%p488_p13)
}
  0x19   : > { %s492_s6 = scalar_lea.vmem %s129_s21, 512  ;;  %p500_p6 = scmp.lt.s32.totalorder %s129_s21, %s129_s21 }
  0x1a   : > { %p493_p0 = scmp.ne.s32.totalorder %s129_s21, %s492_s6  ;;  %p501_p1 = scmp.lt.s32.totalorder %s492_s6, %s492_s6 }
  0x1c   : > { %p495_p2 = pnand %p493_p0, %p481_p9  ;;  %p502_p4 = por %p501_p1, %p500_p6 }
  0x1e   : > { %p496_p3 = pneg %p495_p2 }
  0x20   : > { %p503_p5 = pnand %p502_p4, %p496_p3 }
  0x22   : > { %506 = shalt.err (!%p503_p5)
}
  0x23   : > { %s578_s7 = smov 128   ;;  %s579_s8 = smov 8  }
  0x24   : > { %436 = dma.hbm_to_vmem [thread:$0]  (!%p643_p7), %s756_s1, 512, %s129_s21, [#allocation5], %s578_s7, %s578_s7, %s579_s8  }
  0x25   : > { %p22_p1 = scmp.eq.s32.totalorder %s21_s25, 0  ;;  %p31_p4 = scmp.ne.s32.totalorder %s571_s14, %s567_s13 }
  0x26   : > { %p32_p5 = scmp.eq.s32.totalorder %s575_s15, 0  ;;  %p442_p8 = scmp.lt.s32.totalorder %s575_s15, 2 }
  0x27   : > { %s677_s11 = scalar_select %p22_p1, %s571_s14, %s24_s24  }
  0x28   : > { %p33_p9 = por %p32_p5, %p31_p4  ;;  %s145_s12 = sand.u32 1, %s571_s14  }
  0x29   : > { %s388_s20 = sshll.u32 %s145_s12, 4  ;;  %s401_s26 = sshll.u32 %s575_s15, 8 }
  0x2a   : > { %s684_s22 = scalar_lea.hbm %s755_s0, %s401_s26  ;;  %s149_s21 = scalar_lea.vmem [#allocation2], %s388_s20 }
  0x2b   : > { %s156_s25 = sshll.u32 %s149_s21, 4  ;;  %p688_p7 = pnand %p442_p8, %p33_p9  ;;  %s686_s25 = int_to_ptr.vmem [resolvable:$true] %s156_s25 }
  0x2c   : > { %s692_s29 = scalar_lea.sflag [#allocation3], %s145_s12  ;;  %s507_s30 = scalar_lea.hbm %s684_s22, 256 }
  0x2d   : > { %p508_p10 = scmp.ne.s32.totalorder %s684_s22, %s507_s30  ;;  %p509_p11 = pneg %p688_p7 }
  0x2e   : > { %s512_s6 = scalar_lea.hbm %s755_s0, 512  ;;  %p513_p0 = scmp.lt.u32.totalorder %s684_s22, %s755_s0 }
  0x2f   : > { %p510_p12 = pnand %p509_p11, %p508_p10  ;;  %p514_p2 = scmp.lt.u32.totalorder %s512_s6, %s507_s30 }
  0x30   : > { %p516_p6 = scmp.lt.u32.totalorder %s507_s30, %s684_s22 }
  0x31   : > { %p511_p13 = pneg %p510_p12  ;;  %p515_p3 = por %p514_p2, %p513_p0 }
  0x33   : > { %p517_p1 = por %p516_p6, %p515_p3 }
  0x35   : > { %p518_p4 = pnand %p517_p1, %p511_p13 }
  0x37   : > { %521 = shalt.err (!%p518_p4)
}
  0x38   : > { %s522_s12 = scalar_lea.vmem %s686_s25, 256  ;;  %s580_s20 = smov [#allocation2]  }
  0x39   : > { %p523_p5 = scmp.ne.s32.totalorder %s686_s25, %s522_s12  ;;  %s527_s26 = sshll.u32 %s580_s20, 4  ;;  %s528_s26 = int_to_ptr.vmem [resolvable:$false] %s527_s26 }
  0x3a   : > { %s529_s27 = scalar_lea.vmem %s528_s26, 512  ;;  %p530_p10 = scmp.lt.s32.totalorder %s686_s25, %s528_s26 }
  0x3b   : > { %p525_p8 = pnand %p523_p5, %p509_p11  ;;  %p531_p12 = scmp.lt.s32.totalorder %s529_s27, %s522_s12 }
  0x3d   : > { %p526_p9 = pneg %p525_p8  ;;  %p532_p0 = por %p531_p12, %p530_p10 }
  0x3f   : > { %p533_p2 = pnand %p532_p0, %p526_p9 }
  0x41   : > { %536 = shalt.err (!%p533_p2)
}
  0x42   : > { %440 = dma.hbm_to_vmem [thread:$0]  (!%p688_p7), %s684_s22, 256, %s686_s25, %s692_s29, %s578_s7, %s578_s7, %s579_s8  }
  0x43   : > { %p768_p11 = scmp.ne.s32.totalorder %s765_s19, 0 }
  0x44   : > { %s170_s28 = sand.u32 (!%p768_p11), 1, %s567_s13   ;;  %p769_p13 = scmp.ne.s32.totalorder (!%p768_p11), %s764_s18, 0 }
  0x45   : > { %168 = sbr.rel (%p768_p11) target bundleno = 307 (0x133), region = 32  ;;  %s392_s21 = sshll.u32 (!%p768_p11), %s170_s28, 4 }
  0x46   : > { %s171_s30 = scalar_lea.sflag (!%p768_p11), [#allocation3], %s170_s28  ;;  %s174_s4 = scalar_lea.vmem (!%p768_p11), [#allocation2], %s392_s21 }
  0x4c   : > { %554 = dma.done.wait (%p769_p13), %s171_s30, 256  }
  0x4d   : > { %556 = vsyncadd (%p769_p13), %s171_s30, 4294967040  ;;  %p770_p3 = scmp.ne.s32.totalorder %s763_s17, 0 }
  0x4f   : > { %558 = dma.done.wait (%p770_p3), [#allocation5], 512  }
  0x50   : > { %560 = vsyncadd (%p770_p3), [#allocation5], 4294966784  ;;  %vm221_vm0 = vcmask 261120   ;;  %v210_v0 = vld [vmem:[#allocation4] sm:$0xff]  ;;  %v211_v1 = vld [vmem:[#allocation4 + $0x8] sm:$0xff]  ;;  %s394_s18 = sshll.u32 %s383_s16, 1 }
  0x51   : > { %v212_v2 = vld [vmem:[#allocation4 + $0x10] sm:$0xff]  ;;  %v419_v3 = vpack.c.bf16 %v211_v1, %v210_v0  ;;  %v213_v4 = vld [vmem:[#allocation4 + $0x18] sm:$0xff]  ;;  %p203_p7 = scmp.lt.s32.totalorder %s394_s18, 3  ;;  %v396_v8 = vld [vmem:[%s757_s2] ss:$0 sm:$0xff]  ;;  %vm303_vm1 = vcmask 785408  }
  0x52   : > { %v208_v5 = vld [vmem:[%s174_s4] sm:$0xff]  ;;  %v423_v6 = vpack.c.bf16 %v213_v4, %v212_v2  ;;  %v209_v7 = vld [vmem:[%s174_s4 + $0x8] sm:$0xff] }
  0x53   : > { %416 = vmatprep.mubr.msk.f32.mxu0 %vm221_vm0, %v208_v5  ;;  %420 = vmatprep.subr.bf16.mxu0 %v419_v3  ;;  %s776_s18 = smov (!%p203_p7, %s394_s18), 3 }
  0x54   : > { %422 = vmatpush3.bf16.msra.mxu0 %v419_v3  ;;  %s395_s17 = sshll.u32 %s776_s18, 3 }
  0x55   : > { %424 = vmatprep.subr.bf16.mxu0 %v423_v6  ;;  %s206_s25 = scalar_lea.vmem %s758_s3, %s395_s17 }
  0x58   : > { %426 = vmatpush3.bf16.msra.mxu0 %v423_v6 }
  0x5b   : > { %417 = vmatmul.mubr.msk.f32.vlgmr.msra.gmra.mrb[0].mxu0 %vm221_vm0, %v209_v7 }
 0x12e   : > { %v418_v9 = vpop.f32.mrb[0].mxu0 }
 0x12f   : > { %v294_v10 = vpop.f32.mrb[1].mxu0  ;;  %v300_v12 = vadd.f32 %v418_v9, %v396_v8 }
 0x130   : > { %v295_v11 = vadd.f32 %v396_v8, %v294_v10 }
 0x131   : > { %305 = vst.msk [vmem:[%s206_s25 + $0x8] sm:$0xff] %vm303_vm1, %v300_v12 }
 0x132   : > { %304 = vst.msk [vmem:[%s206_s25] sm:$0xff] %vm303_vm1, %v295_v11 }
 0x133 PF: > { %p14_p6 = scmp.ge.s32.totalorder %s648_s23, 4   ;;  %s771_s12 = smov %s567_s13 }
 0x134   : > { %s772_s13 = smov %s571_s14  ;;  %s773_s14 = smov %s677_s11 }
 0x135   : > { %s774_s15 = smov %s648_s23  ;;  %16 = sbr.rel (!%p14_p6) target bundleno = 4 (0x4), region = 76 }
 0x13c   :  { %328 = vsyncpa [#allocation3], 1 }
 0x13d   :  { %330 = vsyncpa [#allocation3 + $0x1], 1 }
 0x13e   :  { %331 = vsyncpa [#allocation5], 1 }

// kernel: patchtst_attention.3
= control target key start
LH: loop header
LB: loop body
LE: loop exit
PB: predicated region body
PF: predicated region fallthrough
CT: control target
= control target key end

     0   :  { %10 = vsyncpa [#allocation4], 0  ;;  %s2552_s0 = inlined_call_operand.vmem [shape: f32[4,8,96], index: 0, kind: input, shape index: {}]   ;;  %s2553_s1 = inlined_call_operand.vmem [shape: f32[32,32], index: 1, kind: input, shape index: {}]   ;;  %s2554_s2 = inlined_call_operand.vmem [shape: f32[1,32], index: 2, kind: input, shape index: {}]   ;;  %s2555_s3 = inlined_call_operand.hbm [shape: f32[4,8,32], index: 3, kind: output, shape index: {0}]   ;;  %s2556_s4 = inlined_call_operand.hbm [shape: f32[4,4,8,8], index: 4, kind: output, shape index: {1}]  }
   0x1   :  { %12 = vsyncpa [#allocation4 + $0x1], 0 }
   0x2   :  { %13 = vsyncpa [#allocation6], 0 }
   0x3   :  { %15 = vsyncpa [#allocation6 + $0x1], 0  ;;  %s2240_s15 = smov 0   ;;  %s2242_s16 = smov 0  }
   0x4   :  { %s2244_s17 = smov 0   ;;  %s2246_s18 = smov 0  }
   0x5 LB: > { %s2261_s19 = sadd.s32 4294967295, %s2194_s18   ;;  %s1817_s20 = sadd.s32 4294967294, %s2194_s18   ;;  %s2194_s18 = sphi %s2246_s18, %s2562_s18   ;;  %s2190_s17 = sphi %s2244_s17, %s2561_s17   ;;  %s2186_s16 = sphi %s2242_s16, %s2560_s16   ;;  %s2182_s15 = sphi %s2240_s15, %s2559_s15  }
   0x6   : > { %s2265_s21 = sadd.s32 1, %s2194_s18   ;;  %s96_s22 = sadd.s32 1, %s2190_s17 }
   0x7   : > { %s93_s23 = ssub.s32 %s2194_s18, %s2265_s21  ;;  %p106_p0 = scmp.ne.s32.totalorder %s2190_s17, %s2186_s16 }
   0x8   : > { %p94_p1 = scmp.eq.s32.totalorder %s93_s23, 0  ;;  %p107_p2 = scmp.eq.s32.totalorder %s2261_s19, 1 }
   0x9   : > { %p112_p3 = scmp.ne.s32.totalorder %s2186_s16, %s2182_s15  ;;  %p113_p4 = scmp.eq.s32.totalorder %s1817_s20, 1 }
   0xa   : > { %s2276_s24 = scalar_select %p94_p1, %s2190_s17, %s96_s22  }
   0xb   : > { %p2278_p5 = por %p107_p2, %p106_p0  ;;  %p2282_p6 = por %p113_p4, %p112_p3 }
   0xc   : > { %p1820_p7 = scmp.ge.s32.totalorder %s2194_s18, 1  ;;  %p172_p8 = scmp.lt.s32.totalorder %s2194_s18, 3 }
   0xe   : > { %p173_p9 = pnand %p1820_p7, %p172_p8 }
   0xf   : > { %s1823_s27 = sshll.u32 (!%p173_p9), %s2261_s19, 1  ;;  %v2196_v0 = vmov (!%p173_p9), 0.0   ;;  %vm2197_vm0 = vmmov (!%p173_p9), 0   ;;  %s2198_s6 = smov (!%p173_p9), 96   ;;  %vm216_vm1 = vcmask (!%p173_p9), 64512   ;;  %vm891_vm2 = vcmask (!%p173_p9), 130112  }
  0x10   : > { %176 = sbr.rel (%p173_p9) target bundleno = 2829 (0xb0d), region = 32  ;;  %p204_p10 = scmp.lt.s32.totalorder (!%p173_p9), %s1823_s27, 3  ;;  %1908 = vmatprep.subr.mxu1 (!%p173_p9), %v2196_v0  ;;  %1910 = vmatprep.mubr.msk.f32.mxu1 (!%p173_p9), %vm2197_vm0, %v2196_v0  ;;  %vm1239_vm3 = vcmask (!%p173_p9), 195712   ;;  %vm1587_vm4 = vcmask (!%p173_p9), 261312   ;;  %vm1603_vm5 = vcmask (!%p173_p9), 261120  }
  0x11   : > { %1918 = vmatprep.subr.mxu0 (!%p173_p9), %v2196_v0  ;;  %1920 = vmatprep.mubr.msk.f32.mxu0 (!%p173_p9), %vm2197_vm0, %v2196_v0  ;;  %s2199_s7 = smov (!%p173_p9), 64   ;;  %s2200_s8 = smov (!%p173_p9), 88  }
  0x12   : > { %s2201_s9 = smov (!%p173_p9), 120   ;;  %s2329_s10 = sand.u32 (!%p173_p9), 1, %s2186_s16  }
  0x13   : > { %s1822_s11 = sshll.u32 (!%p173_p9), %s2329_s10, 6  ;;  %s2202_s13 = smov (!%p173_p9), 56  }
  0x14   : > { %s2333_s12 = scalar_lea.vmem (!%p173_p9), [#allocation5], %s1822_s11  ;;  %s2203_s14 = smov (!%p173_p9), 80  }
  0x15   : > { %s2204_s20 = smov (!%p173_p9), 112   ;;  %s2205_s22 = smov (!%p173_p9), 48  }
  0x16   : > { %s2206_s23 = smov (!%p173_p9), 72   ;;  %s2209_s29 = smov (!%p173_p9), 8  }
  0x17   : > { %s2564_s27 = smov (!%p204_p10, %s1823_s27), 3  ;;  %s2210_s30 = smov 16  }
  0x18   : > { %s1824_s28 = sshll.u32 %s2564_s27, 3  ;;  %s2207_s27 = smov 104  }
  0x19   : > { %s207_s5 = scalar_lea.vmem %s2552_s0, %s1824_s28  ;;  %s2208_s28 = smov 40  }
  0x1a   : > { %v2298_v1 = vld [vmem:[%s207_s5] sm:$0xff]  ;;  %v2301_v2 = vld [vmem:[%s207_s5 + $0x8] sm:$0xff]  ;;  %s1693_s5 = scalar_lea.sflag [#allocation6], %s2329_s10 }
  0x1b   : > { %214 = vrot.lane.b32.xlu0 %v2298_v1, %s2198_s6 }
  0x1f   : > { %292 = vrot.lane.b32.xlu0 %v2301_v2, %s2198_s6 }
  0x8d   : > { %v215_v3 = vpop.permute.xlu0 %214 }
  0x8e   : > { %1909 = vmatpush3.xpose.msk.msra.mxu1 %vm216_vm1, %v215_v3 }
  0x8f   : > { %1913 = vmatprep.subr.mxu1 %v2196_v0 }
  0x91   : > { %1911 = vmatmul.mubr.msk.f32.vlgmr.msra.gmra.mrb[0].mxu1 %vm216_vm1, %v2298_v1  ;;  %v293_v4 = vpop.permute.xlu0 %292 }
  0x92   : > { %1914 = vmatpush3.xpose.msk.msra.mxu1 %vm216_vm1, %v293_v4  ;;  %1915 = vmatprep.mubr.msk.f32.mxu1 %vm2197_vm0, %v2196_v0 }
  0x93   : > { %1923 = vmatprep.subr.mxu1 %v2196_v0 }
  0x95   : > { %1916 = vmatmul.mubr.msk.f32.vlgmr.msra.gmra.mrb[2].mxu1 %vm216_vm1, %v2301_v2 }
  0x96   : > { %1925 = vmatprep.mubr.msk.f32.mxu1 %vm2197_vm0, %v2196_v0 }
 0x164   : > { %v287_v5 = vpop.f32.mrb[0].mxu1 }
 0x165   : > { %v1912_v6 = vpop.f32.mrb[1].mxu1  ;;  %v368_v7 = vsel %vm216_vm1, %v287_v5, -inf }
 0x166   : > { %369 = vmax.xlane.f32.xlu1 %v368_v7 }
 0x168   : > { %v364_v8 = vpop.f32.mrb[2].mxu1 }
 0x169   : > { %v1917_v9 = vpop.f32.mrb[3].mxu1  ;;  %v371_v10 = vsel %vm216_vm1, %v364_v8, -inf }
 0x16a   : > { %372 = vmax.xlane.f32.xlu1 %v371_v10 }
 0x17b   : > { %392 = vrot.lane.b32.xlu1 %v2298_v1, %s2199_s7 }
 0x17f   : > { %468 = vrot.lane.b32.xlu1 %v2301_v2, %s2199_s7  ;;  %s2212_s7 = smov [#allocation5]  }
 0x183   : > { %551 = vrot.lane.b32.xlu1 %v2298_v1, %s2200_s8 }
 0x187   : > { %630 = vrot.lane.b32.xlu1 %v2301_v2, %s2200_s8  ;;  %s2104_s8 = sshll.u32 %s2212_s7, 4  ;;  %s2105_s8 = int_to_ptr.vmem [resolvable:$false] %s2104_s8 }
 0x1f3   : > { %v370_v11 = vpop.xlane.xlu1 %369 }
 0x1f4   : > { %v374_v12 = vsub.f32 %v287_v5, %v370_v11 }
 0x1f6   : > { %v376_v13 = vmul.f32 1.442695, %v374_v12 }
 0x1f7   : > { %v373_v14 = vpop.xlane.xlu1 %372 }
 0x1f8   : > { %2068 = vpow2.f32 %v376_v13  ;;  %v375_v15 = vsub.f32 %v364_v8, %v373_v14 }
 0x1fa   : > { %v378_v16 = vmul.f32 1.442695, %v375_v15 }
 0x1fb   : > { %v393_v17 = vpop.permute.xlu1 %392 }
 0x1fc   : > { %2070 = vpow2.f32 %v378_v16  ;;  %1919 = vmatpush3.msra.mxu0 %v393_v17 }
 0x1fd   : > { %1928 = vmatprep.subr.mxu0 %v2196_v0 }
 0x1ff   : > { %v469_v18 = vpop.permute.xlu1 %468 }
 0x200   : > { %1924 = vmatpush3.msra.mxu1 %v469_v18 }
 0x201   : > { %1933 = vmatprep.subr.mxu1 %v2196_v0 }
 0x202   : > { %v2069_v19 = vpop.eup %2068 }
 0x203   : > { %v380_v20 = vsel %vm216_vm1, %v2069_v19, 0.0  ;;  %v552_v23 = vpop.permute.xlu1 %551 }
 0x204   : > { %381 = vadd.xlane.f32.xlu0 %v380_v20 }
 0x206   : > { %v2071_v21 = vpop.eup %2070 }
 0x207   : > { %v383_v22 = vsel %vm216_vm1, %v2071_v21, 0.0  ;;  %v631_v24 = vpop.permute.xlu1 %630 }
 0x208   : > { %384 = vadd.xlane.f32.xlu1 %v383_v22 }
 0x219   : > { %628 = vrot.lane.b32.xlu1 %v2301_v2, %s2201_s9 }
 0x21a   : > { %549 = vrot.lane.b32.xlu0 %v2298_v1, %s2201_s9 }
 0x291   : > { %v382_v25 = vpop.xlane.xlu0 %381 }
 0x292   : > { %2072 = vrcp.f32 %v382_v25 }
 0x295   : > { %v385_v26 = vpop.xlane.xlu1 %384  ;;  %v550_v30 = vpop.permute.xlu0 %549 }
 0x296   : > { %2074 = vrcp.f32 %v385_v26 }
 0x299   : > { %v629_v32 = vpop.permute.xlu1 %628 }
 0x29c   : > { %v2073_v27 = vpop.eup %2072 }
 0x29d   : > { %v388_v28 = vmul.f32 %v2073_v27, %v2069_v19 }
 0x29f   : > { %1921 = vmatmul.mubr.msk.f32.vlgmr.msra.gmra.mrb[0].mxu0 %vm216_vm1, %v388_v28  ;;  %390 = vst.msk [vmem:[%s2333_s12] sm:$0xff] %vm216_vm1, %v388_v28 }
 0x2a0   : > { %v2075_v29 = vpop.eup %2074  ;;  %1929 = vmatpush3.xpose.msk.msra.mxu0 %vm216_vm1, %v552_v23  ;;  %1930 = vmatprep.mubr.msk.f32.mxu0 %vm2197_vm0, %v2196_v0 }
 0x2a1   : > { %v389_v31 = vmul.f32 %v2075_v29, %v2071_v21  ;;  %1938 = vmatprep.subr.mxu0 %v2196_v0 }
 0x2a3   : > { %1926 = vmatmul.mubr.msk.f32.vlgmr.msra.gmra.mrb[4].mxu1 %vm216_vm1, %v389_v31  ;;  %1931 = vmatmul.mubr.msk.f32.vlgmr.msra.gmra.mrb[2].mxu0 %vm216_vm1, %v550_v30  ;;  %391 = vst.msk [vmem:[%s2333_s12 + $0x20] sm:$0xff] %vm216_vm1, %v389_v31 }
 0x2a4   : > { %1934 = vmatpush3.xpose.msk.msra.mxu1 %vm216_vm1, %v631_v24  ;;  %1935 = vmatprep.mubr.msk.f32.mxu1 %vm2197_vm0, %v2196_v0 }
 0x2a5   : > { %1943 = vmatprep.subr.mxu1 %v2196_v0  ;;  %1940 = vmatprep.mubr.msk.f32.mxu0 %vm2197_vm0, %v2196_v0 }
 0x2a7   : > { %1936 = vmatmul.mubr.msk.f32.vlgmr.msra.gmra.mrb[6].mxu1 %vm216_vm1, %v629_v32 }
 0x2a8   : > { %1945 = vmatprep.mubr.msk.f32.mxu1 %vm2197_vm0, %v2196_v0 }
 0x372   : > { %v464_v33 = vpop.f32.mrb[0].mxu0 }
 0x373   : > { %544 = vst.msk [vmem:[#allocation2] sm:$0xff] %vm216_vm1, %v464_v33  ;;  %v1922_v34 = vpop.f32.mrb[1].mxu0 }
 0x376   : > { %v540_v35 = vpop.f32.mrb[4].mxu1  ;;  %v623_v36 = vpop.f32.mrb[2].mxu0 }
 0x377   : > { %545 = vst.msk [vmem:[#allocation2 + $0x8] sm:$0xff] %vm216_vm1, %v540_v35  ;;  %v1927_v37 = vpop.f32.mrb[5].mxu1  ;;  %v1932_v38 = vpop.f32.mrb[3].mxu0  ;;  %v706_v39 = vsel %vm216_vm1, %v623_v36, -inf }
 0x378   : > { %707 = vmax.xlane.f32.xlu1 %v706_v39 }
 0x37a   : > { %v702_v40 = vpop.f32.mrb[6].mxu1 }
 0x37b   : > { %v1937_v41 = vpop.f32.mrb[7].mxu1  ;;  %v709_v42 = vsel %vm216_vm1, %v702_v40, -inf }
 0x37c   : > { %710 = vmax.xlane.f32.xlu0 %v709_v42 }
 0x389   : > { %731 = vrot.lane.b32.xlu1 %v2298_v1, %s2202_s13 }
 0x38d   : > { %899 = vrot.lane.b32.xlu1 %v2298_v1, %s2203_s14 }
 0x391   : > { %978 = vrot.lane.b32.xlu1 %v2301_v2, %s2203_s14 }
 0x392   : > { %807 = vrot.lane.b32.xlu0 %v2301_v2, %s2202_s13 }
 0x396   : > { %897 = vrot.lane.b32.xlu0 %v2298_v1, %s2204_s20 }
 0x405   : > { %v708_v43 = vpop.xlane.xlu1 %707 }
 0x406   : > { %v712_v44 = vsub.f32 %v623_v36, %v708_v43 }
 0x408   : > { %v714_v45 = vmul.f32 1.442695, %v712_v44 }
 0x409   : > { %v711_v46 = vpop.xlane.xlu0 %710  ;;  %v732_v47 = vpop.permute.xlu1 %731 }
 0x40a   : > { %2076 = vpow2.f32 %v714_v45  ;;  %v713_v48 = vsub.f32 %v702_v40, %v711_v46  ;;  %1939 = vmatpush3.msra.mxu0 %v732_v47 }
 0x40b   : > { %1948 = vmatprep.subr.mxu0 %v2196_v0 }
 0x40c   : > { %v716_v49 = vmul.f32 1.442695, %v713_v48 }
 0x40d   : > { %v808_v54 = vpop.permute.xlu0 %807  ;;  %v900_v55 = vpop.permute.xlu1 %899 }
 0x40e   : > { %2078 = vpow2.f32 %v716_v49  ;;  %1944 = vmatpush3.msra.mxu1 %v808_v54 }
 0x40f   : > { %1953 = vmatprep.subr.mxu1 %v2196_v0 }
 0x411   : > { %v979_v56 = vpop.permute.xlu1 %978  ;;  %v898_v62 = vpop.permute.xlu0 %897 }
 0x414   : > { %v2077_v50 = vpop.eup %2076 }
 0x415   : > { %v718_v51 = vsel %vm216_vm1, %v2077_v50, 0.0 }
 0x416   : > { %719 = vadd.xlane.f32.xlu1 %v718_v51 }
 0x418   : > { %v2079_v52 = vpop.eup %2078 }
 0x419   : > { %v721_v53 = vsel %vm216_vm1, %v2079_v52, 0.0 }
 0x41a   : > { %722 = vadd.xlane.f32.xlu1 %v721_v53 }
 0x42b   : > { %976 = vrot.lane.b32.xlu1 %v2301_v2, %s2204_s20  ;;  %s2211_s20 = smov 24  }
 0x4a3   : > { %v720_v57 = vpop.xlane.xlu1 %719 }
 0x4a4   : > { %2080 = vrcp.f32 %v720_v57 }
 0x4a7   : > { %v723_v58 = vpop.xlane.xlu1 %722 }
 0x4a8   : > { %2082 = vrcp.f32 %v723_v58 }
 0x4ab   : > { %v977_v3 = vpop.permute.xlu1 %976 }
 0x4ae   : > { %v2081_v59 = vpop.eup %2080 }
 0x4af   : > { %v726_v60 = vmul.f32 %v2081_v59, %v2077_v50 }
 0x4b1   : > { %1941 = vmatmul.mubr.msk.f32.vlgmr.msra.gmra.mrb[4].mxu0 %vm216_vm1, %v726_v60  ;;  %1835 = vst.msk [vmem:[%s2333_s12 + $0x8] sm:$0xff] %vm216_vm1, %v726_v60 }
 0x4b2   : > { %v2083_v61 = vpop.eup %2082  ;;  %1949 = vmatpush3.xpose.msk.msra.mxu0 %vm216_vm1, %v900_v55  ;;  %1950 = vmatprep.mubr.msk.f32.mxu0 %vm2197_vm0, %v2196_v0 }
 0x4b3   : > { %v727_v63 = vmul.f32 %v2083_v61, %v2079_v52  ;;  %1958 = vmatprep.subr.mxu0 %v2196_v0 }
 0x4b5   : > { %1946 = vmatmul.mubr.msk.f32.vlgmr.msra.gmra.mrb[8].mxu1 %vm216_vm1, %v727_v63  ;;  %1951 = vmatmul.mubr.msk.f32.vlgmr.msra.gmra.mrb[6].mxu0 %vm216_vm1, %v898_v62  ;;  %1836 = vst.msk [vmem:[%s2333_s12 + $0x28] sm:$0xff] %vm216_vm1, %v727_v63 }
 0x4b6   : > { %1954 = vmatpush3.xpose.msk.msra.mxu1 %vm216_vm1, %v979_v56  ;;  %1955 = vmatprep.mubr.msk.f32.mxu1 %vm2197_vm0, %v2196_v0 }
 0x4b7   : > { %1963 = vmatprep.subr.mxu1 %v2196_v0  ;;  %1960 = vmatprep.mubr.msk.f32.mxu0 %vm2197_vm0, %v2196_v0 }
 0x4b9   : > { %1956 = vmatmul.mubr.msk.f32.vlgmr.msra.gmra.mrb[10].mxu1 %vm216_vm1, %v977_v3 }
 0x4ba   : > { %1965 = vmatprep.mubr.msk.f32.mxu1 %vm2197_vm0, %v2196_v0 }
 0x584   : > { %v2388_v4 = vpop.f32.mrb[4].mxu0 }
 0x585   : > { %v1942_v5 = vpop.f32.mrb[5].mxu0 }
 0x586   : > { %v1593_v5 = vld [vmem:[%s2553_s1 + $0x8] sm:$0xff] }
 0x588   : > { %v2390_v6 = vpop.f32.mrb[8].mxu1  ;;  %v971_v7 = vpop.f32.mrb[6].mxu0 }
 0x589   : > { %v1947_v8 = vpop.f32.mrb[9].mxu1  ;;  %v1952_v9 = vpop.f32.mrb[7].mxu0  ;;  %v1054_v10 = vsel %vm216_vm1, %v971_v7, -inf }
 0x58a   : > { %1055 = vmax.xlane.f32.xlu0 %v1054_v10  ;;  %v1595_v8 = vld [vmem:[%s2553_s1 + $0x18] sm:$0xff] }
 0x58c   : > { %v1050_v11 = vpop.f32.mrb[10].mxu1 }
 0x58d   : > { %v1957_v12 = vpop.f32.mrb[11].mxu1  ;;  %v1057_v13 = vsel %vm216_vm1, %v1050_v11, -inf }
 0x58e   : > { %1058 = vmax.xlane.f32.xlu1 %v1057_v13 }
 0x59f   : > { %1079 = vrot.lane.b32.xlu1 %v2298_v1, %s2205_s22 }
 0x5a0   : > { %1155 = vrot.lane.b32.xlu0 %v2301_v2, %s2205_s22  ;;  %s1723_s22 = sshll.u32 %s2333_s12, 4  ;;  %s2459_s22 = int_to_ptr.vmem [resolvable:$true] %s1723_s22 }
 0x5a1   : > { %s2100_s6 = scalar_lea.vmem %s2459_s22, 1024  ;;  %p2107_p0 = scmp.lt.s32.totalorder %s2459_s22, %s2105_s8 }
 0x5a2   : > { %p2101_p11 = scmp.ne.s32.totalorder %s2459_s22, %s2100_s6 }
 0x5a3   : > { %1247 = vrot.lane.b32.xlu1 %v2298_v1, %s2206_s23 }
 0x5a4   : > { %p2102_p12 = pnand %p2101_p11, %p2278_p5 }
 0x5a6   : > { %p2103_p13 = pneg %p2102_p12 }
 0x5a7   : > { %1326 = vrot.lane.b32.xlu1 %v2301_v2, %s2206_s23  ;;  %s1869_s23 = sshll.u32 %s2261_s19, 10 }
 0x5ab   : > { %1324 = vrot.lane.b32.xlu1 %v2301_v2, %s2207_s27 }
 0x617   : > { %v1056_v14 = vpop.xlane.xlu0 %1055 }
 0x618   : > { %v1060_v15 = vsub.f32 %v971_v7, %v1056_v14  ;;  %v1594_v7 = vld [vmem:[%s2553_s1 + $0x10] sm:$0xff] }
 0x619   : > { %v2003_v9 = vpack.c.bf16 %v1595_v8, %v1594_v7 }
 0x61a   : > { %v1062_v16 = vmul.f32 1.442695, %v1060_v15 }
 0x61b   : > { %v1059_v17 = vpop.xlane.xlu1 %1058  ;;  %v1156_v18 = vpop.permute.xlu0 %1155 }
 0x61c   : > { %2084 = vpow2.f32 %v1062_v16  ;;  %v1061_v19 = vsub.f32 %v1050_v11, %v1059_v17  ;;  %1964 = vmatpush3.msra.mxu1 %v1156_v18 }
 0x61d   : > { %1973 = vmatprep.subr.mxu1 %v2196_v0 }
 0x61e   : > { %v1064_v20 = vmul.f32 1.442695, %v1061_v19 }
 0x61f   : > { %v1080_v25 = vpop.permute.xlu1 %1079 }
 0x620   : > { %2086 = vpow2.f32 %v1064_v20  ;;  %1959 = vmatpush3.msra.mxu0 %v1080_v25 }
 0x621   : > { %1968 = vmatprep.subr.mxu0 %v2196_v0 }
 0x623   : > { %v1248_v28 = vpop.permute.xlu1 %1247 }
 0x626   : > { %v2085_v21 = vpop.eup %2084 }
 0x627   : > { %v1066_v22 = vsel %vm216_vm1, %v2085_v21, 0.0  ;;  %v1327_v31 = vpop.permute.xlu1 %1326 }
 0x628   : > { %1067 = vadd.xlane.f32.xlu0 %v1066_v22 }
 0x62a   : > { %v2087_v23 = vpop.eup %2086 }
 0x62b   : > { %v1069_v24 = vsel %vm216_vm1, %v2087_v23, 0.0  ;;  %v1325_v35 = vpop.permute.xlu1 %1324 }
 0x62c   : > { %1070 = vadd.xlane.f32.xlu0 %v1069_v24 }
 0x642   : > { %1245 = vrot.lane.b32.xlu0 %v2298_v1, %s2207_s27 }
 0x6b5   : > { %v1068_v26 = vpop.xlane.xlu0 %1067 }
 0x6b6   : > { %2088 = vrcp.f32 %v1068_v26 }
 0x6b9   : > { %v1071_v27 = vpop.xlane.xlu0 %1070 }
 0x6ba   : > { %2090 = vrcp.f32 %v1071_v27 }
 0x6bd   : > { %v1246_v33 = vpop.permute.xlu0 %1245 }
 0x6c0   : > { %v2089_v29 = vpop.eup %2088 }
 0x6c1   : > { %v1074_v30 = vmul.f32 %v2089_v29, %v2085_v21 }
 0x6c3   : > { %1961 = vmatmul.mubr.msk.f32.vlgmr.msra.gmra.mrb[8].mxu0 %vm216_vm1, %v1074_v30  ;;  %1843 = vst.msk [vmem:[%s2333_s12 + $0x10] sm:$0xff] %vm216_vm1, %v1074_v30 }
 0x6c4   : > { %v2091_v32 = vpop.eup %2090  ;;  %1969 = vmatpush3.xpose.msk.msra.mxu0 %vm216_vm1, %v1248_v28  ;;  %1970 = vmatprep.mubr.msk.f32.mxu0 %vm2197_vm0, %v2196_v0 }
 0x6c5   : > { %v1075_v34 = vmul.f32 %v2091_v32, %v2087_v23  ;;  %1978 = vmatprep.subr.mxu0 %v2196_v0 }
 0x6c7   : > { %1966 = vmatmul.mubr.msk.f32.vlgmr.msra.gmra.mrb[12].mxu1 %vm216_vm1, %v1075_v34  ;;  %1971 = vmatmul.mubr.msk.f32.vlgmr.msra.gmra.mrb[10].mxu0 %vm216_vm1, %v1246_v33  ;;  %1844 = vst.msk [vmem:[%s2333_s12 + $0x30] sm:$0xff] %vm216_vm1, %v1075_v34 }
 0x6c8   : > { %1974 = vmatpush3.xpose.msk.msra.mxu1 %vm216_vm1, %v1327_v31  ;;  %1975 = vmatprep.mubr.msk.f32.mxu1 %vm2197_vm0, %v2196_v0 }
 0x6c9   : > { %1980 = vmatprep.mubr.msk.f32.mxu0 %vm2197_vm0, %v2196_v0  ;;  %1983 = vmatprep.subr.mxu1 %v2196_v0 }
 0x6cb   : > { %1976 = vmatmul.mubr.msk.f32.vlgmr.msra.gmra.mrb[14].mxu1 %vm216_vm1, %v1325_v35 }
 0x6cc   : > { %1985 = vmatprep.mubr.msk.f32.mxu1 %vm2197_vm0, %v2196_v0 }
 0x796   : > { %v1151_v36 = vpop.f32.mrb[8].mxu0 }
 0x797   : > { %v1962_v37 = vpop.f32.mrb[9].mxu0 }
 0x79a   : > { %v1227_v38 = vpop.f32.mrb[12].mxu1  ;;  %v1319_v39 = vpop.f32.mrb[10].mxu0 }
 0x79b   : > { %v1967_v40 = vpop.f32.mrb[13].mxu1  ;;  %v1972_v41 = vpop.f32.mrb[11].mxu0  ;;  %v1402_v42 = vsel %vm216_vm1, %v1319_v39, -inf }
 0x79c   : > { %1403 = vmax.xlane.f32.xlu0 %v1402_v42 }
 0x79e   : > { %v1398_v43 = vpop.f32.mrb[14].mxu1 }
 0x79f   : > { %v1977_v44 = vpop.f32.mrb[15].mxu1  ;;  %v1405_v45 = vsel %vm216_vm1, %v1398_v43, -inf }
 0x7a0   : > { %1406 = vmax.xlane.f32.xlu1 %v1405_v45 }
 0x7b1   : > { %1427 = vrot.lane.b32.xlu1 %v2298_v1, %s2208_s28 }
 0x7b5   : > { %885 = vrot.lane.b32.xlu1 %v2388_v4, %s2209_s29 }
 0x7b9   : > { %887 = vrot.lane.b32.xlu1 %v2390_v6, %s2209_s29 }
 0x7bd   : > { %1235 = vrot.lane.b32.xlu1 %v1227_v38, %s2210_s30 }
 0x829   : > { %v1404_v0 = vpop.xlane.xlu0 %1403 }
 0x82a   : > { %v1408_v46 = vsub.f32 %v1319_v39, %v1404_v0 }
 0x82c   : > { %v1410_v47 = vmul.f32 1.442695, %v1408_v46 }
 0x82d   : > { %v1407_v48 = vpop.xlane.xlu1 %1406 }
 0x82e   : > { %2092 = vpow2.f32 %v1410_v47  ;;  %v1409_v49 = vsub.f32 %v1398_v43, %v1407_v48 }
 0x830   : > { %v1412_v50 = vmul.f32 1.442695, %v1409_v49 }
 0x831   : > { %v1428_v51 = vpop.permute.xlu1 %1427 }
 0x832   : > { %2094 = vpow2.f32 %v1412_v50  ;;  %1979 = vmatpush3.msra.mxu0 %v1428_v51 }
 0x835   : > { %v886_v1 = vpop.permute.xlu1 %885 }
 0x836   : > { %892 = vst.msk [vmem:[#allocation2] sm:$0xff] %vm891_vm2, %v886_v1 }
 0x838   : > { %v2093_v52 = vpop.eup %2092 }
 0x839   : > { %v888_v53 = vpop.permute.xlu1 %887  ;;  %v1414_v54 = vsel %vm216_vm1, %v2093_v52, 0.0 }
 0x83a   : > { %893 = vst.msk [vmem:[#allocation2 + $0x8] sm:$0xff] %vm891_vm2, %v888_v53  ;;  %1415 = vadd.xlane.f32.xlu0 %v1414_v54 }
 0x83c   : > { %v2095_v55 = vpop.eup %2094 }
 0x83d   : > { %v1236_v56 = vpop.permute.xlu1 %1235  ;;  %v1417_v57 = vsel %vm216_vm1, %v2095_v55, 0.0 }
 0x83e   : > { %1241 = vst.msk [vmem:[#allocation2 + $0x8] sm:$0xff] %vm1239_vm3, %v1236_v56  ;;  %1418 = vadd.xlane.f32.xlu0 %v1417_v57 }
 0x854   : > { %1503 = vrot.lane.b32.xlu0 %v2301_v2, %s2208_s28  ;;  %v1592_v2 = vld [vmem:[%s2553_s1] sm:$0xff] }
 0x855   : > { %v1999_v6 = vpack.c.bf16 %v1593_v5, %v1592_v2 }
 0x857   : > { %2000 = vmatprep.subr.bf16.mxu0 %v1999_v6 }
 0x858   : > { %1233 = vrot.lane.b32.xlu0 %v1151_v36, %s2210_s30  ;;  %s2465_s30 = scalar_lea.hbm %s2556_s4, %s1869_s23 }
 0x8c7   : > { %v1416_v58 = vpop.xlane.xlu0 %1415 }
 0x8c8   : > { %2096 = vrcp.f32 %v1416_v58 }
 0x8cb   : > { %v1419_v59 = vpop.xlane.xlu0 %1418 }
 0x8cc   : > { %2098 = vrcp.f32 %v1419_v59 }
 0x8cf   : > { %v1504_v60 = vpop.permute.xlu0 %1503 }
 0x8d0   : > { %1984 = vmatpush3.msra.mxu1 %v1504_v60 }
 0x8d2   : > { %v2097_v61 = vpop.eup %2096 }
 0x8d3   : > { %v1422_v62 = vmul.f32 %v2097_v61, %v2093_v52  ;;  %v1234_v63 = vpop.permute.xlu0 %1233 }
 0x8d4   : > { %1240 = vst.msk [vmem:[#allocation2] sm:$0xff] %vm1239_vm3, %v1234_v63 }
 0x8d5   : > { %1981 = vmatmul.mubr.msk.f32.vlgmr.msra.gmra.mrb[12].mxu0 %vm216_vm1, %v1422_v62  ;;  %1851 = vst.msk [vmem:[%s2333_s12 + $0x18] sm:$0xff] %vm216_vm1, %v1422_v62 }
 0x8d6   : > { %v2099_v3 = vpop.eup %2098  ;;  %2002 = vmatpush3.bf16.msra.mxu0 %v1999_v6 }
 0x8d7   : > { %v1423_v4 = vmul.f32 %v2099_v3, %v2095_v55  ;;  %2004 = vmatprep.subr.bf16.mxu0 %v2003_v9 }
 0x8d9   : > { %1986 = vmatmul.mubr.msk.f32.vlgmr.msra.gmra.mrb[16].mxu1 %vm216_vm1, %v1423_v4  ;;  %1852 = vst.msk [vmem:[%s2333_s12 + $0x38] sm:$0xff] %vm216_vm1, %v1423_v4  ;;  %s2106_s12 = scalar_lea.vmem %s2105_s8, 2048 }
 0x8da   : > { %2006 = vmatpush3.bf16.msra.mxu0 %v2003_v9  ;;  %p2108_p1 = scmp.lt.s32.totalorder %s2106_s12, %s2100_s6 }
 0x8dc   : > { %p2109_p2 = por %p2108_p1, %p2107_p0 }
 0x8de   : > { %p2110_p3 = pnand %p2109_p2, %p2103_p13 }
 0x9a8   : > { %v1499_v10 = vpop.f32.mrb[12].mxu0 }
 0x9a9   : > { %1581 = vrot.lane.b32.xlu0 %v1499_v10, %s2211_s20  ;;  %v1982_v11 = vpop.f32.mrb[13].mxu0 }
 0x9ac   : > { %v1575_v12 = vpop.f32.mrb[16].mxu1 }
 0x9ad   : > { %1583 = vrot.lane.b32.xlu1 %v1575_v12, %s2211_s20  ;;  %v1987_v13 = vpop.f32.mrb[17].mxu1 }
 0xa1b   : > { %v1582_v14 = vpop.permute.xlu0 %1581 }
 0xa1c   : > { %1588 = vst.msk [vmem:[#allocation2] sm:$0xff] %vm1587_vm4, %v1582_v14 }
 0xa1f   : > { %v1584_v15 = vpop.permute.xlu1 %1583 }
 0xa20   : > { %1589 = vst.msk [vmem:[#allocation2 + $0x8] sm:$0xff] %vm1587_vm4, %v1584_v15 }
 0xa23   : > { %v1590_v16 = vld [vmem:[#allocation2] sm:$0xff] }
 0xa24   : > { %1996 = vmatprep.mubr.msk.f32.mxu0 %vm1603_vm5, %v1590_v16 }
 0xa27   : > { %v1591_v17 = vld [vmem:[#allocation2 + $0x8] sm:$0xff] }
 0xa28   : > { %1997 = vmatmul.mubr.msk.f32.vlgmr.msra.gmra.mrb[14].mxu0 %vm1603_vm5, %v1591_v17 }
 0xa29   : > { %2113 = shalt.err (!%p2110_p3)
}
 0xa2a   : > { %s2114_s9 = scalar_lea.hbm %s2465_s30, 1024  ;;  %s2118_s14 = scalar_lea.hbm %s2556_s4, 2048 }
 0xa2b   : > { %p2115_p4 = scmp.ne.s32.totalorder %s2465_s30, %s2114_s9  ;;  %p2119_p9 = scmp.lt.u32.totalorder %s2465_s30, %s2556_s4 }
 0xa2c   : > { %p2120_p10 = scmp.lt.u32.totalorder %s2118_s14, %s2114_s9  ;;  %p2122_p12 = scmp.lt.u32.totalorder %s2114_s9, %s2465_s30 }
 0xa2d   : > { %p2116_p7 = pnand %p2115_p4, %p2278_p5 }
 0xa2e   : > { %p2121_p11 = por %p2120_p10, %p2119_p9 }
 0xa2f   : > { %p2117_p8 = pneg %p2116_p7 }
 0xa30   : > { %p2123_p13 = por %p2122_p12, %p2121_p11 }
 0xa32   : > { %p2124_p0 = pnand %p2123_p13, %p2117_p8 }
 0xa34   : > { %2127 = shalt.err (!%p2124_p0)
}
 0xa35   : > { %s2213_s27 = smov 128   ;;  %s1821_s28 = sshll.u32 %s2329_s10, 4  ;;  %v1855_v18 = vld [vmem:[%s2554_s2] ss:$0 sm:$0xff] }
 0xa36   : > { %2008 = dma.vmem_to_hbm [thread:$0]  (%p2278_p5), %s2459_s22, 1024, %s2465_s30, %s1693_s5, %s2213_s27, %s2213_s27, %s2209_s29  }
 0xa37   : > { %s195_s8 = scalar_lea.vmem [#allocation3], %s1821_s28  ;;  %s1867_s9 = sshll.u32 %s2261_s19, 8 }
 0xa38   : > { %s1706_s12 = sshll.u32 %s195_s8, 4  ;;  %s2504_s30 = scalar_lea.hbm %s2555_s3, %s1867_s9  ;;  %s2499_s12 = int_to_ptr.vmem [resolvable:$true] %s1706_s12 }
 0xa39   : > { %s1688_s5 = scalar_lea.sflag [#allocation4], %s2329_s10  ;;  %s2128_s19 = scalar_lea.vmem %s2499_s12, 256 }
 0xa3a   : > { %p2129_p1 = scmp.ne.s32.totalorder %s2499_s12, %s2128_s19  ;;  %s2214_s13 = smov [#allocation3]  }
 0xa3b   : > { %s2132_s14 = sshll.u32 %s2214_s13, 4  ;;  %s2133_s14 = int_to_ptr.vmem [resolvable:$false] %s2132_s14 }
 0xa3c   : > { %p2130_p2 = pnand %p2129_p1, %p2278_p5  ;;  %s2134_s20 = scalar_lea.vmem %s2133_s14, 512 }
 0xa3d   : > { %p2135_p4 = scmp.lt.s32.totalorder %s2499_s12, %s2133_s14  ;;  %p2136_p7 = scmp.lt.s32.totalorder %s2134_s20, %s2128_s19 }
 0xa3e   : > { %p2131_p3 = pneg %p2130_p2 }
 0xa3f   : > { %p2137_p8 = por %p2136_p7, %p2135_p4 }
 0xa41   : > { %p2138_p9 = pnand %p2137_p8, %p2131_p3 }
 0xafb   : > { %v1998_v19 = vpop.f32.mrb[14].mxu0 }
 0xafc   : > { %v1682_v20 = vadd.f32 %v1998_v19, %v1855_v18  ;;  %v1676_v21 = vpop.f32.mrb[15].mxu0 }
 0xafd   : > { %v1677_v22 = vadd.f32 %v1855_v18, %v1676_v21 }
 0xafe   : > { %1686 = vst.msk [vmem:[%s195_s8 + $0x8] sm:$0xff] %vm1603_vm5, %v1682_v20 }
 0xaff   : > { %1685 = vst.msk [vmem:[%s195_s8] sm:$0xff] %vm1603_vm5, %v1677_v22 }
 0xb00   : > { %2141 = shalt.err (!%p2138_p9)
}
 0xb01   : > { %s2142_s23 = scalar_lea.hbm %s2504_s30, 256  ;;  %s2146_s7 = scalar_lea.hbm %s2555_s3, 512 }
 0xb02   : > { %p2143_p10 = scmp.ne.s32.totalorder %s2504_s30, %s2142_s23  ;;  %p2147_p13 = scmp.lt.u32.totalorder %s2504_s30, %s2555_s3 }
 0xb03   : > { %p2148_p0 = scmp.lt.u32.totalorder %s2146_s7, %s2142_s23  ;;  %p2150_p2 = scmp.lt.u32.totalorder %s2142_s23, %s2504_s30 }
 0xb04   : > { %p2144_p11 = pnand %p2143_p10, %p2278_p5 }
 0xb05   : > { %p2149_p1 = por %p2148_p0, %p2147_p13 }
 0xb06   : > { %p2145_p12 = pneg %p2144_p11 }
 0xb07   : > { %p2151_p3 = por %p2150_p2, %p2149_p1 }
 0xb09   : > { %p2152_p4 = pnand %p2151_p3, %p2145_p12 }
 0xb0b   : > { %2155 = shalt.err (!%p2152_p4)
}
 0xb0c   : > { %2007 = dma.vmem_to_hbm [thread:$0]  (%p2278_p5), %s2499_s12, 256, %s2504_s30, %s1688_s5, %s2213_s27, %s2213_s27, %s2209_s29  }
 0xb0d PF: > { %p2018_p7 = scmp.ge.s32.totalorder %s2194_s18, 2  ;;  %s1738_s11 = sand.u32 1, %s2182_s15  }
 0xb0e   : > { %s1739_s22 = scalar_lea.sflag [#allocation4], %s1738_s11 }
 0xb0f   : > { %p2012_p8 = pnand %p2018_p7, %p2282_p6 }
 0xb11   : > { %2173 = dma.done.wait (!%p2012_p8), %s1739_s22, 256  }
 0xb12   : > { %2175 = vsyncadd (!%p2012_p8), %s1739_s22, 4294967040  ;;  %s1748_s25 = scalar_lea.sflag [#allocation6], %s1738_s11 }
 0xb13   : > { %2177 = dma.done.wait (!%p2012_p8), %s1748_s25, 1024  }
 0xb14   : > { %2179 = vsyncadd (!%p2012_p8), %s1748_s25, 4294966272  ;;  %p18_p5 = scmp.ge.s32.totalorder %s2265_s21, 4   ;;  %s2559_s15 = smov %s2186_s16 }
 0xb15   : > { %s2560_s16 = smov %s2190_s17  ;;  %s2561_s17 = smov %s2276_s24 }
 0xb16   : > { %s2562_s18 = smov %s2265_s21  ;;  %20 = sbr.rel (!%p18_p5) target bundleno = 5 (0x5), region = 87 }
 0xb1d   :  { %1753 = vsyncpa [#allocation4], 1 }
 0xb1e   :  { %1755 = vsyncpa [#allocation4 + $0x1], 1 }
 0xb1f   :  { %1756 = vsyncpa [#allocation6], 1 }
 0xb20   :  { %1758 = vsyncpa [#allocation6 + $0x1], 1 }

</bundles_post_ra>
